<compile_context>
chip_gen: v7x
topology: tpu7x:2x2x1
jax: 0.10.0
libtpu: 0.0.40
codegen_flags: <defaults>
</compile_context>

<pallas_src>
import functools

import jax
import jax.numpy as jnp
from jax.experimental import pallas as pl
from jax.experimental.pallas import tpu as pltpu


def _triplet_kernel(x_ref, sqr_ref, sqc_ref, tr_ref, tc_ref, loss_ref,
                    *, n, half, tm, margin, hard_factor):
    i = pl.program_id(0)

    # Row tile sliced from the resident (normalized, sqrt(2)-scaled, bf16) operand in VMEM.
    r0 = pl.multiple_of(i * tm, tm)
    x_rows = x_ref[pl.ds(r0, tm), :]          # (tm, d) bf16
    x_cols = x_ref[...]                       # (n,  d) bf16 (DMA'd into VMEM once)

    # Operands were pre-scaled by sqrt(2), so this dot is exactly 2 * <xn_r, xn_c>.
    # Contraction on dim 1 of both sides -> no transpose is materialized.
    two_gram = jax.lax.dot_general(x_rows, x_cols, (((1,), (1,)), ((), ())),
                                   preferred_element_type=jnp.float32)   # (tm, n) f32

    # Squared pairwise distances of the normalized features.  The row/col squared norms
    # are exact f32, computed once in the wrapper.
    dist2 = (sqr_ref[...] + sqc_ref[...]) - two_gram                     # (tm, n)

    # Label mask.
    same = tr_ref[...] == tc_ref[...]                                    # (tm, n)

    # Half-batch mining window: rows in one half only look at columns in the other half.
    col_first = jax.lax.broadcasted_iota(jnp.int32, (1, n), 1) < half    # (1, n)
    if half % tm == 0:
        # Tiles never straddle the half boundary -> row-half membership is one scalar.
        row_first = (i * tm) < half
        window = col_first != row_first                                  # (1, n)
    else:
        row_first = (jax.lax.broadcasted_iota(jnp.int32, (tm, 1), 0) + i * tm) < half
        window = col_first != row_first                                  # (tm, n)

    big = jnp.float32(1e30)
    ap2 = jnp.max(jnp.where(window & same, dist2, -big), axis=1, keepdims=True)   # (tm, 1)
    an2 = jnp.min(jnp.where(window & (~same), dist2, big), axis=1, keepdims=True)  # (tm, 1)

    # clamp(1e-6) and sqrt are monotone -> they commute with the max/min mining;
    # only 2*tm sqrts total.
    dist_ap = jnp.sqrt(jnp.maximum(ap2, 1e-6)) * (1.0 + hard_factor)
    dist_an = jnp.sqrt(jnp.maximum(an2, 1e-6)) * (1.0 - hard_factor)

    # MarginRankingLoss(margin) with y = 1 per row: max(0, dist_ap - dist_an + margin).
    loss_ref[...] = jnp.maximum(dist_ap - dist_an + margin, jnp.float32(0.0))


def _pick_row_tile(n):
    """MXU-aligned row tile; prefer >= 2 tiles (feeds both v7x TensorCores) as long as
    that does not shrink the tile below 64 rows (keeps v5e/v6e MXU rows busy)."""
    divisors = [c for c in (512, 256, 128, 64, 32, 16, 8) if n % c == 0]
    if not divisors:
        return n  # tiny / odd n: single full-size tile
    multi = next((c for c in divisors if n // c >= 2), None)
    if multi is not None and multi >= 64:
        return multi
    return divisors[0]


def _vmem_limit_bytes(n, d, tm):
    # Single-buffered bf16 resident operand + double-buffered per-tile blocks
    # + ~6 live (tm, n) f32 temporaries + slack.
    need = n * d * 2 + 4 * (2 * tm * 4 + 2 * n * 4) + 6 * tm * n * 4 + (2 << 20)
    limit = max(32 << 20, min(int(need), 96 << 20))
    try:
        # Cap below physical VMEM (64 MiB/TC on v7x, 128 MiB on v5e/v6e).
        limit = min(limit, int(pltpu.get_tpu_info().vmem_capacity_bytes) * 3 // 4)
    except Exception:
        limit = min(limit, 48 << 20)
    return limit


def triplet_loss(inputs, targets, margin=0.3, hard_factor=0.0):
    """inputs: (n, d) float array, targets: (n,) int labels -> scalar f32 loss."""
    n, d = inputs.shape
    x = inputs.astype(jnp.float32)

    # ---- normalization stats, computed ONCE here (hoisted out of the kernel) ----
    norm = jnp.sqrt(jnp.sum(x * x, axis=1, keepdims=True))               # (n, 1) f32
    inv = 1.0 / (norm + 1e-6)
    sq = jnp.square(norm * inv)                                          # ||xn||^2, exact f32
    # Resident MXU operand: normalized features pre-scaled by sqrt(2) (so the in-kernel dot
    # yields 2*<xn_r, xn_c> directly), cast to bf16 for the native MXU path.
    x_op = (x * (inv * jnp.sqrt(jnp.float32(2.0)))).astype(jnp.bfloat16)  # (n, d) bf16

    sq_row = sq                                                          # (n, 1) f32
    sq_col = sq.reshape(1, n)                                            # (1, n) f32
    t_rows = targets.astype(jnp.int32).reshape(n, 1)
    t_cols = targets.astype(jnp.int32).reshape(1, n)

    tm = _pick_row_tile(n)
    num_tiles = n // tm

    kernel = functools.partial(
        _triplet_kernel,
        n=n, half=n // 2, tm=tm,
        margin=float(margin), hard_factor=float(hard_factor),
    )

    def run(single_buffer):
        pm = pl.Buffered(1) if single_buffer else None  # constant-index blocks: 1 DMA total
        return pl.pallas_call(
            kernel,
            out_shape=jax.ShapeDtypeStruct((n, 1), jnp.float32),
            grid_spec=pltpu.PrefetchScalarGridSpec(
                num_scalar_prefetch=0,
                grid=(num_tiles,),
                in_specs=[
                    pl.BlockSpec((n, d), lambda i: (0, 0), pipeline_mode=pm),  # resident bf16 operand
                    pl.BlockSpec((tm, 1), lambda i: (i, 0)),                   # row ||xn||^2
                    pl.BlockSpec((1, n), lambda i: (0, 0), pipeline_mode=pm),  # col ||xn||^2
                    pl.BlockSpec((tm, 1), lambda i: (i, 0)),                   # row labels
                    pl.BlockSpec((1, n), lambda i: (0, 0), pipeline_mode=pm),  # col labels
                ],
                out_specs=pl.BlockSpec((tm, 1), lambda i: (i, 0)),
            ),
            compiler_params=pltpu.CompilerParams(
                dimension_semantics=("parallel",),          # row-tile axis shards across TCs
                vmem_limit_bytes=_vmem_limit_bytes(n, d, tm),
            ),
        )(x_op, sq_row, sq_col, t_rows, t_cols)

    try:
        per_row = run(True)
    except Exception:
        # Fallback: default double buffering (only costs VMEM; semantics identical).
        per_row = run(False)

    # 'mean' reduction of MarginRankingLoss, done on the tiny (n, 1) per-row output.
    return jnp.mean(per_row)


def _reference_loss(inputs, targets, margin=0.3, hard_factor=0.0):
    """Pure-JAX reference mirroring the PyTorch module (for sanity check)."""
    x = inputs.astype(jnp.float32)
    n = x.shape[0]
    half = n // 2
    x = x / (jnp.linalg.norm(x, axis=-1, keepdims=True) + 1e-6)
    sq = jnp.sum(x * x, axis=1, keepdims=True)
    gram = jnp.matmul(x, x.T, precision="highest")
    dist = jnp.sqrt(jnp.maximum(sq + sq.T - 2.0 * gram, 1e-6))
    mask = targets[:, None] == targets[None, :]
    row = jnp.arange(n)[:, None]
    col = jnp.arange(n)[None, :]
    window = (row < half) != (col < half)
    dist_ap = jnp.max(jnp.where(mask & window, dist, -1e30), axis=1)
    dist_an = jnp.min(jnp.where((~mask) & window, dist, 1e30), axis=1)
    dist_ap = dist_ap * (1.0 + hard_factor)
    dist_an = dist_an * (1.0 - hard_factor)
    return jnp.mean(jnp.maximum(dist_ap - dist_an + margin, 0.0))


if __name__ == "__main__":
    key = jax.random.PRNGKey(0)

    # Small shape matching the module: (batch_size, feat_dim) with the P*K half-batch
    # identity structure the mining scheme expects.
    n, d = 8, 32
    inputs = jax.random.normal(key, (n, d), dtype=jnp.float32)
    targets = jnp.array([0, 1, 2, 3, 0, 1, 2, 3], dtype=jnp.int32)

    # Tolerance accommodates the bf16 MXU gram (~1e-3-scale error in mined distances).
    for hf in (0.0, 0.1):
        loss = triplet_loss(inputs, targets, margin=0.3, hard_factor=hf)
        jax.block_until_ready(loss)
        ref = _reference_loss(inputs, targets, margin=0.3, hard_factor=hf)
        assert jnp.allclose(loss, ref, atol=5e-3, rtol=5e-3), (hf, loss, ref)

    # Multi-tile case exercising the aligned-tile (scalar half-window) path and the
    # 2-tile "parallel" grid.
    n2, d2 = 128, 64
    k1, _ = jax.random.split(key)
    inputs2 = jax.random.normal(k1, (n2, d2), dtype=jnp.float32)
    base = jnp.repeat(jnp.arange(n2 // 8, dtype=jnp.int32), 4)   # 16 ids x 4 per half
    targets2 = jnp.concatenate([base, base])
    loss2 = triplet_loss(inputs2, targets2, margin=0.3, hard_factor=0.1)
    jax.block_until_ready(loss2)
    ref2 = _reference_loss(inputs2, targets2, margin=0.3, hard_factor=0.1)
    assert jnp.allclose(loss2, ref2, atol=5e-3, rtol=5e-3), (loss2, ref2)

    print("KERNEL_OK")
</pallas_src>

<mosaic_0001>
module attributes {stable_mosaic.version = 11 : i64} {
  func.func @_triplet_kernel(%arg0: i32, %arg1: memref<8x32xbf16, #tpu.memory_space<vmem>>, %arg2: memref<8x1xf32, #tpu.memory_space<vmem>>, %arg3: memref<1x8xf32, #tpu.memory_space<vmem>>, %arg4: memref<8x1xi32, #tpu.memory_space<vmem>>, %arg5: memref<1x8xi32, #tpu.memory_space<vmem>>, %arg6: memref<8x1xf32, #tpu.memory_space<vmem>>) attributes {dimension_semantics = [#tpu.dimension_semantics<parallel>], iteration_bounds = array<i64: 1>, scalar_prefetch = 0 : i64, scratch_operands = 0 : i64, tpu.core_type = #tpu.core_type<tc>, window_params = [{pipeline_mode = #tpu.pipeline_mode<synchronous>, transform_indices = @transform_0, window_bounds = array<i64: 8, 32>}, {transform_indices = @transform_1, window_bounds = array<i64: 8, 1>}, {pipeline_mode = #tpu.pipeline_mode<synchronous>, transform_indices = @transform_2, window_bounds = array<i64: 1, 8>}, {transform_indices = @transform_3, window_bounds = array<i64: 8, 1>}, {pipeline_mode = #tpu.pipeline_mode<synchronous>, transform_indices = @transform_4, window_bounds = array<i64: 1, 8>}, {transform_indices = @transform_5, window_bounds = array<i64: 8, 1>}]} {
    %c8_i32 = arith.constant 8 : i32
    %0 = arith.muli %arg0, %c8_i32 : i32
    %1 = tpu.assume_multiple %0, 8 : i32
    %2 = arith.index_cast %1 : i32 to index
    %c0 = arith.constant 0 : index
    %3 = vector.load %arg1[%2, %c0] : memref<8x32xbf16, #tpu.memory_space<vmem>>, vector<8x32xbf16>
    %c0_0 = arith.constant 0 : index
    %c0_1 = arith.constant 0 : index
    %4 = vector.load %arg1[%c0_0, %c0_1] : memref<8x32xbf16, #tpu.memory_space<vmem>>, vector<8x32xbf16>
    %cst = arith.constant dense<0.000000e+00> : vector<8x8xf32>
    %5 = tpu.matmul %3, %4, %cst {dimension_numbers = #tpu.dot_dimension_numbers<[1], [1], [0], [0], [0, 0, 1, 0], [], []>} : vector<8x32xbf16>, vector<8x32xbf16>, vector<8x8xf32> -> vector<8x8xf32>
    %c0_2 = arith.constant 0 : index
    %c0_3 = arith.constant 0 : index
    %6 = vector.load %arg2[%c0_2, %c0_3] : memref<8x1xf32, #tpu.memory_space<vmem>>, vector<8x1xf32>
    %c0_4 = arith.constant 0 : index
    %c0_5 = arith.constant 0 : index
    %7 = vector.load %arg3[%c0_4, %c0_5] : memref<1x8xf32, #tpu.memory_space<vmem>>, vector<1x8xf32>
    %8 = vector.broadcast %6 : vector<8x1xf32> to vector<8x8xf32>
    %9 = vector.broadcast %7 : vector<1x8xf32> to vector<8x8xf32>
    %10 = arith.addf %8, %9 : vector<8x8xf32>
    %11 = arith.subf %10, %5 : vector<8x8xf32>
    %c0_6 = arith.constant 0 : index
    %c0_7 = arith.constant 0 : index
    %12 = vector.load %arg4[%c0_6, %c0_7] : memref<8x1xi32, #tpu.memory_space<vmem>>, vector<8x1xi32>
    %c0_8 = arith.constant 0 : index
    %c0_9 = arith.constant 0 : index
    %13 = vector.load %arg5[%c0_8, %c0_9] : memref<1x8xi32, #tpu.memory_space<vmem>>, vector<1x8xi32>
    %14 = vector.broadcast %12 : vector<8x1xi32> to vector<8x8xi32>
    %15 = vector.broadcast %13 : vector<1x8xi32> to vector<8x8xi32>
    %16 = arith.cmpi eq, %14, %15 : vector<8x8xi32>
    %17 = tpu.iota {dimensions = array<i32: 1>} : vector<1x8xi32>
    %c4_i32 = arith.constant 4 : i32
    %18 = vector.broadcast %c4_i32 : i32 to vector<1x8xi32>
    %19 = arith.cmpi slt, %17, %18 : vector<1x8xi32>
    %20 = tpu.iota {dimensions = array<i32: 0>} : vector<8x1xi32>
    %c8_i32_10 = arith.constant 8 : i32
    %21 = arith.muli %arg0, %c8_i32_10 : i32
    %22 = vector.broadcast %21 : i32 to vector<8x1xi32>
    %23 = arith.addi %20, %22 : vector<8x1xi32>
    %c4_i32_11 = arith.constant 4 : i32
    %24 = vector.broadcast %c4_i32_11 : i32 to vector<8x1xi32>
    %25 = arith.cmpi slt, %23, %24 : vector<8x1xi32>
    %26 = vector.broadcast %19 : vector<1x8xi1> to vector<8x8xi1>
    %27 = vector.broadcast %25 : vector<8x1xi1> to vector<8x8xi1>
    %28 = vector.broadcast %26 : vector<8x8xi1> to vector<8x8xi1>
    %29 = vector.broadcast %27 : vector<8x8xi1> to vector<8x8xi1>
    %30 = arith.xori %28, %29 : vector<8x8xi1>
    %31 = arith.andi %30, %16 : vector<8x8xi1>
    %cst_12 = arith.constant 0.000000e+00 : f32
    %cst_13 = arith.constant 1.000000e+30 : f32
    %32 = arith.subf %cst_12, %cst_13 : f32
    %33 = vector.broadcast %32 : f32 to vector<8x8xf32>
    %34 = arith.select %31, %11, %33 : vector<8x8xi1>, vector<8x8xf32>
    %cst_14 = arith.constant dense<0xFF800000> : vector<8xf32>
    %35 = vector.multi_reduction <maximumf>, %34, %cst_14 [1] : vector<8x8xf32> to vector<8xf32>
    %36 = vector.shape_cast %35 : vector<8xf32> to vector<8x1xf32>
    %cst_15 = arith.constant dense<true> : vector<8x8xi1>
    %37 = arith.xori %16, %cst_15 : vector<8x8xi1>
    %38 = arith.andi %30, %37 : vector<8x8xi1>
    %cst_16 = arith.constant 1.000000e+30 : f32
    %39 = vector.broadcast %cst_16 : f32 to vector<8x8xf32>
    %40 = arith.select %38, %11, %39 : vector<8x8xi1>, vector<8x8xf32>
    %cst_17 = arith.constant dense<0x7F800000> : vector<8xf32>
    %41 = vector.multi_reduction <minimumf>, %40, %cst_17 [1] : vector<8x8xf32> to vector<8xf32>
    %42 = vector.shape_cast %41 : vector<8xf32> to vector<8x1xf32>
    %cst_18 = arith.constant 9.99999997E-7 : f32
    %43 = vector.broadcast %cst_18 : f32 to vector<8x1xf32>
    %44 = arith.maximumf %36, %43 : vector<8x1xf32>
    %45 = math.sqrt %44 : vector<8x1xf32>
    %cst_19 = arith.constant 1.000000e+00 : f32
    %46 = vector.broadcast %cst_19 : f32 to vector<8x1xf32>
    %47 = arith.mulf %45, %46 : vector<8x1xf32>
    %cst_20 = arith.constant 9.99999997E-7 : f32
    %48 = vector.broadcast %cst_20 : f32 to vector<8x1xf32>
    %49 = arith.maximumf %42, %48 : vector<8x1xf32>
    %50 = math.sqrt %49 : vector<8x1xf32>
    %cst_21 = arith.constant 1.000000e+00 : f32
    %51 = vector.broadcast %cst_21 : f32 to vector<8x1xf32>
    %52 = arith.mulf %50, %51 : vector<8x1xf32>
    %53 = arith.subf %47, %52 : vector<8x1xf32>
    %cst_22 = arith.constant 3.000000e-01 : f32
    %54 = vector.broadcast %cst_22 : f32 to vector<8x1xf32>
    %55 = arith.addf %53, %54 : vector<8x1xf32>
    %cst_23 = arith.constant 0.000000e+00 : f32
    %56 = vector.broadcast %cst_23 : f32 to vector<8x1xf32>
    %57 = arith.maximumf %55, %56 : vector<8x1xf32>
    %c0_24 = arith.constant 0 : index
    %c0_25 = arith.constant 0 : index
    %58 = vector.load %arg6[%c0_24, %c0_25] : memref<8x1xf32, #tpu.memory_space<vmem>>, vector<8x1xf32>
    tpu.vector_store %arg6[%c0_24, %c0_25], %57 {strides = array<i32>} : memref<8x1xf32, #tpu.memory_space<vmem>>, vector<8x1xf32>,
    return
  }
  func.func @transform_0(%arg0: i32) -> (i32, i32) {
    %c0_i32 = arith.constant 0 : i32
    %c0_i32_0 = arith.constant 0 : i32
    %c0_i32_1 = arith.constant 0 : i32
    return %c0_i32, %c0_i32_0 : i32, i32
  }
  func.func @transform_1(%arg0: i32) -> (i32, i32) {
    %c0_i32 = arith.constant 0 : i32
    %c0_i32_0 = arith.constant 0 : i32
    return %arg0, %c0_i32 : i32, i32
  }
  func.func @transform_2(%arg0: i32) -> (i32, i32) {
    %c0_i32 = arith.constant 0 : i32
    %c0_i32_0 = arith.constant 0 : i32
    %c0_i32_1 = arith.constant 0 : i32
    return %c0_i32, %c0_i32_0 : i32, i32
  }
  func.func @transform_3(%arg0: i32) -> (i32, i32) {
    %c0_i32 = arith.constant 0 : i32
    %c0_i32_0 = arith.constant 0 : i32
    return %arg0, %c0_i32 : i32, i32
  }
  func.func @transform_4(%arg0: i32) -> (i32, i32) {
    %c0_i32 = arith.constant 0 : i32
    %c0_i32_0 = arith.constant 0 : i32
    %c0_i32_1 = arith.constant 0 : i32
    return %c0_i32, %c0_i32_0 : i32, i32
  }
  func.func @transform_5(%arg0: i32) -> (i32, i32) {
    %c0_i32 = arith.constant 0 : i32
    %c0_i32_0 = arith.constant 0 : i32
    return %arg0, %c0_i32 : i32, i32
  }
}

module attributes {stable_mosaic.version = 11 : i64} {
  func.func @_triplet_kernel(%arg0: i32, %arg1: memref<8x32xbf16, #tpu.memory_space<vmem>>, %arg2: memref<8x1xf32, #tpu.memory_space<vmem>>, %arg3: memref<1x8xf32, #tpu.memory_space<vmem>>, %arg4: memref<8x1xi32, #tpu.memory_space<vmem>>, %arg5: memref<1x8xi32, #tpu.memory_space<vmem>>, %arg6: memref<8x1xf32, #tpu.memory_space<vmem>>) attributes {dimension_semantics = [#tpu.dimension_semantics<parallel>], iteration_bounds = array<i64: 1>, scalar_prefetch = 0 : i64, scratch_operands = 0 : i64, tpu.core_type = #tpu.core_type<tc>, window_params = [{pipeline_mode = #tpu.pipeline_mode<synchronous>, transform_indices = @transform_0, window_bounds = array<i64: 8, 32>}, {transform_indices = @transform_1, window_bounds = array<i64: 8, 1>}, {pipeline_mode = #tpu.pipeline_mode<synchronous>, transform_indices = @transform_2, window_bounds = array<i64: 1, 8>}, {transform_indices = @transform_3, window_bounds = array<i64: 8, 1>}, {pipeline_mode = #tpu.pipeline_mode<synchronous>, transform_indices = @transform_4, window_bounds = array<i64: 1, 8>}, {transform_indices = @transform_5, window_bounds = array<i64: 8, 1>}]} {
    %c8_i32 = arith.constant 8 : i32
    %0 = arith.muli %arg0, %c8_i32 : i32
    %1 = tpu.assume_multiple %0, 8 : i32
    %2 = arith.index_cast %1 : i32 to index
    %c0 = arith.constant 0 : index
    %3 = vector.load %arg1[%2, %c0] : memref<8x32xbf16, #tpu.memory_space<vmem>>, vector<8x32xbf16>
    %c0_0 = arith.constant 0 : index
    %c0_1 = arith.constant 0 : index
    %4 = vector.load %arg1[%c0_0, %c0_1] : memref<8x32xbf16, #tpu.memory_space<vmem>>, vector<8x32xbf16>
    %cst = arith.constant dense<0.000000e+00> : vector<8x8xf32>
    %5 = tpu.matmul %3, %4, %cst {dimension_numbers = #tpu.dot_dimension_numbers<[1], [1], [0], [0], [0, 0, 1, 0], [], []>} : vector<8x32xbf16>, vector<8x32xbf16>, vector<8x8xf32> -> vector<8x8xf32>
    %c0_2 = arith.constant 0 : index
    %c0_3 = arith.constant 0 : index
    %6 = vector.load %arg2[%c0_2, %c0_3] : memref<8x1xf32, #tpu.memory_space<vmem>>, vector<8x1xf32>
    %c0_4 = arith.constant 0 : index
    %c0_5 = arith.constant 0 : index
    %7 = vector.load %arg3[%c0_4, %c0_5] : memref<1x8xf32, #tpu.memory_space<vmem>>, vector<1x8xf32>
    %8 = vector.broadcast %6 : vector<8x1xf32> to vector<8x8xf32>
    %9 = vector.broadcast %7 : vector<1x8xf32> to vector<8x8xf32>
    %10 = arith.addf %8, %9 : vector<8x8xf32>
    %11 = arith.subf %10, %5 : vector<8x8xf32>
    %c0_6 = arith.constant 0 : index
    %c0_7 = arith.constant 0 : index
    %12 = vector.load %arg4[%c0_6, %c0_7] : memref<8x1xi32, #tpu.memory_space<vmem>>, vector<8x1xi32>
    %c0_8 = arith.constant 0 : index
    %c0_9 = arith.constant 0 : index
    %13 = vector.load %arg5[%c0_8, %c0_9] : memref<1x8xi32, #tpu.memory_space<vmem>>, vector<1x8xi32>
    %14 = vector.broadcast %12 : vector<8x1xi32> to vector<8x8xi32>
    %15 = vector.broadcast %13 : vector<1x8xi32> to vector<8x8xi32>
    %16 = arith.cmpi eq, %14, %15 : vector<8x8xi32>
    %17 = tpu.iota {dimensions = array<i32: 1>} : vector<1x8xi32>
    %c4_i32 = arith.constant 4 : i32
    %18 = vector.broadcast %c4_i32 : i32 to vector<1x8xi32>
    %19 = arith.cmpi slt, %17, %18 : vector<1x8xi32>
    %20 = tpu.iota {dimensions = array<i32: 0>} : vector<8x1xi32>
    %c8_i32_10 = arith.constant 8 : i32
    %21 = arith.muli %arg0, %c8_i32_10 : i32
    %22 = vector.broadcast %21 : i32 to vector<8x1xi32>
    %23 = arith.addi %20, %22 : vector<8x1xi32>
    %c4_i32_11 = arith.constant 4 : i32
    %24 = vector.broadcast %c4_i32_11 : i32 to vector<8x1xi32>
    %25 = arith.cmpi slt, %23, %24 : vector<8x1xi32>
    %26 = vector.broadcast %19 : vector<1x8xi1> to vector<8x8xi1>
    %27 = vector.broadcast %25 : vector<8x1xi1> to vector<8x8xi1>
    %28 = vector.broadcast %26 : vector<8x8xi1> to vector<8x8xi1>
    %29 = vector.broadcast %27 : vector<8x8xi1> to vector<8x8xi1>
    %30 = arith.xori %28, %29 : vector<8x8xi1>
    %31 = arith.andi %30, %16 : vector<8x8xi1>
    %cst_12 = arith.constant 0.000000e+00 : f32
    %cst_13 = arith.constant 1.000000e+30 : f32
    %32 = arith.subf %cst_12, %cst_13 : f32
    %33 = vector.broadcast %32 : f32 to vector<8x8xf32>
    %34 = arith.select %31, %11, %33 : vector<8x8xi1>, vector<8x8xf32>
    %cst_14 = arith.constant dense<0xFF800000> : vector<8xf32>
    %35 = vector.multi_reduction <maximumf>, %34, %cst_14 [1] : vector<8x8xf32> to vector<8xf32>
    %36 = vector.shape_cast %35 : vector<8xf32> to vector<8x1xf32>
    %cst_15 = arith.constant dense<true> : vector<8x8xi1>
    %37 = arith.xori %16, %cst_15 : vector<8x8xi1>
    %38 = arith.andi %30, %37 : vector<8x8xi1>
    %cst_16 = arith.constant 1.000000e+30 : f32
    %39 = vector.broadcast %cst_16 : f32 to vector<8x8xf32>
    %40 = arith.select %38, %11, %39 : vector<8x8xi1>, vector<8x8xf32>
    %cst_17 = arith.constant dense<0x7F800000> : vector<8xf32>
    %41 = vector.multi_reduction <minimumf>, %40, %cst_17 [1] : vector<8x8xf32> to vector<8xf32>
    %42 = vector.shape_cast %41 : vector<8xf32> to vector<8x1xf32>
    %cst_18 = arith.constant 9.99999997E-7 : f32
    %43 = vector.broadcast %cst_18 : f32 to vector<8x1xf32>
    %44 = arith.maximumf %36, %43 : vector<8x1xf32>
    %45 = math.sqrt %44 : vector<8x1xf32>
    %cst_19 = arith.constant 1.000000e+00 : f32
    %46 = vector.broadcast %cst_19 : f32 to vector<8x1xf32>
    %47 = arith.mulf %45, %46 : vector<8x1xf32>
    %cst_20 = arith.constant 9.99999997E-7 : f32
    %48 = vector.broadcast %cst_20 : f32 to vector<8x1xf32>
    %49 = arith.maximumf %42, %48 : vector<8x1xf32>
    %50 = math.sqrt %49 : vector<8x1xf32>
    %cst_21 = arith.constant 1.000000e+00 : f32
    %51 = vector.broadcast %cst_21 : f32 to vector<8x1xf32>
    %52 = arith.mulf %50, %51 : vector<8x1xf32>
    %53 = arith.subf %47, %52 : vector<8x1xf32>
    %cst_22 = arith.constant 3.000000e-01 : f32
    %54 = vector.broadcast %cst_22 : f32 to vector<8x1xf32>
    %55 = arith.addf %53, %54 : vector<8x1xf32>
    %cst_23 = arith.constant 0.000000e+00 : f32
    %56 = vector.broadcast %cst_23 : f32 to vector<8x1xf32>
    %57 = arith.maximumf %55, %56 : vector<8x1xf32>
    %c0_24 = arith.constant 0 : index
    %c0_25 = arith.constant 0 : index
    %58 = vector.load %arg6[%c0_24, %c0_25] : memref<8x1xf32, #tpu.memory_space<vmem>>, vector<8x1xf32>
    tpu.vector_store %arg6[%c0_24, %c0_25], %57 {strides = array<i32>} : memref<8x1xf32, #tpu.memory_space<vmem>>, vector<8x1xf32>,
    return
  }
  func.func @transform_0(%arg0: i32) -> (i32, i32) {
    %c0_i32 = arith.constant 0 : i32
    %c0_i32_0 = arith.constant 0 : i32
    %c0_i32_1 = arith.constant 0 : i32
    return %c0_i32, %c0_i32_0 : i32, i32
  }
  func.func @transform_1(%arg0: i32) -> (i32, i32) {
    %c0_i32 = arith.constant 0 : i32
    %c0_i32_0 = arith.constant 0 : i32
    return %arg0, %c0_i32 : i32, i32
  }
  func.func @transform_2(%arg0: i32) -> (i32, i32) {
    %c0_i32 = arith.constant 0 : i32
    %c0_i32_0 = arith.constant 0 : i32
    %c0_i32_1 = arith.constant 0 : i32
    return %c0_i32, %c0_i32_0 : i32, i32
  }
  func.func @transform_3(%arg0: i32) -> (i32, i32) {
    %c0_i32 = arith.constant 0 : i32
    %c0_i32_0 = arith.constant 0 : i32
    return %arg0, %c0_i32 : i32, i32
  }
  func.func @transform_4(%arg0: i32) -> (i32, i32) {
    %c0_i32 = arith.constant 0 : i32
    %c0_i32_0 = arith.constant 0 : i32
    %c0_i32_1 = arith.constant 0 : i32
    return %c0_i32, %c0_i32_0 : i32, i32
  }
  func.func @transform_5(%arg0: i32) -> (i32, i32) {
    %c0_i32 = arith.constant 0 : i32
    %c0_i32_0 = arith.constant 0 : i32
    return %arg0, %c0_i32 : i32, i32
  }
}

</mosaic_0001>

<bundles_post_ra>
// kernel: tpu_custom_call.1
= control target key start
LH: loop header
LB: loop body
LE: loop exit
PB: predicated region body
PF: predicated region fallthrough
CT: control target
= control target key end

     0   :  { %vm28_vm0 = vcmask 261120   ;;  %v172_v0 = vmov 0.0   ;;  %vm173_vm1 = vmmov 0   ;;  %v174_v4 = vmov 0   ;;  %s229_s0 = inlined_call_operand.vmem [shape: bf16[8,32], index: 0, kind: input, shape index: {}]   ;;  %s230_s1 = inlined_call_operand.vmem [shape: f32[8,1], index: 1, kind: input, shape index: {}]   ;;  %s231_s3 = inlined_call_operand.vmem [shape: s32[8,1], index: 3, kind: input, shape index: {}]   ;;  %s232_s4 = inlined_call_operand.vmem [shape: s32[1,8], index: 4, kind: input, shape index: {}]   ;;  %s233_s2 = inlined_call_operand.vmem [shape: f32[1,8], index: 2, kind: input, shape index: {}]   ;;  %s234_s5 = inlined_call_operand.vmem [shape: f32[8,1], index: 5, kind: output, shape index: {}]  }
   0x1   :  { %157 = vmatprep.subr.bf16.mxu0 %v172_v0  ;;  %v27_v1 = vld [vmem:[%s229_s0] sm:$0xf]  ;;  %159 = vmatprep.mubr.msk.bf16.mxu0 %vm173_vm1, %v172_v0  ;;  %v100_v7 = vlaneseq  ;;  %vm175_vm6 = vmmov 1   ;;  %vm115_vm8 = vcmask 64512   ;;  %vm144_vm15 = vcmask 7168  }
   0x2   :  { %v75_v2 = vld [vmem:[%s230_s1] sm:$0xff]  ;;  %v33_v3 = vsel %vm28_vm0, %v27_v1, 0  ;;  %167 = vset.pattern.permute.xlu0 %v174_v4 }
   0x3   :  { %158 = vmatpush3.bf16.xpose.msra.mxu0 %v33_v3  ;;  %79 = vperm.xlu0 %167, %v75_v2   ;;  %v90_v5 = vld [vmem:[%s231_s3] sm:$0xff]  ;;  %v101_v9 = vand.u32 127, %v100_v7  ;;  %v104_v10 = vshrl.u32 %v100_v7, 7 }
   0x4   :  { %v26_v6 = vld [vmem:[%s229_s0] sm:$0xf] }
   0x5   :  { %v154_v11 = vld [vmem:[%s232_s4] ss:$0 sm:$0xff]  ;;  %vm102_vm2 = vcmp.lt.s32.totalorder %v101_v9, 4  ;;  %vm107_vm3 = vcmp.lt.s32.totalorder %v104_v10, 4 }
   0x6   :  { %v153_v13 = vld [vmem:[%s233_s2] ss:$0 sm:$0xff]  ;;  %vm112_vm5 = vmxor %vm102_vm2, %vm107_vm3 }
   0x7   :  { %93 = vperm.xlu0 %167, %v90_v5  }
   0xa   :  { %160 = vmatmul.mubr.msk.bf16.vlgmr.msra.gmra.mrb[0].mxu0 %vm28_vm0, %v26_v6 }
  0x82   :  { %v80_v8 = vpop.permute.xlu0 %79 }
  0x83   :  { %v88_v14 = vadd.f32 %v153_v13, %v80_v8 }
  0x86   :  { %v94_v12 = vpop.permute.xlu0 %93 }
  0x87   :  { %vm99_vm4 = vcmp.eq.s32.totalorder %v94_v12, %v154_v11 }
  0x88   :  { %vm119_vm7 = vmxor %vm99_vm4, %vm175_vm6 }
  0x89   :  { %vm113_vm9 = vmand %vm112_vm5, %vm99_vm4 }
  0x8a   :  { %vm120_vm10 = vmand %vm112_vm5, %vm119_vm7 }
  0xdd   :  { %v69_v15 = vpop.f32.mrb[0].mxu0 }
  0xde   :  { %v89_v16 = vsub.f32 %v88_v14, %v69_v15  ;;  %v161_v17 = vpop.f32.mrb[1].mxu0 }
  0xdf   :  { %v72_v18 = vpop.f32.mrb[2].mxu0 }
  0xe0   :  { %v162_v19 = vpop.f32.mrb[3].mxu0  ;;  %v114_v20 = vsel %vm113_vm9, %v89_v16, -1e+30  ;;  %v121_v22 = vsel %vm120_vm10, %v89_v16, 1e+30 }
  0xe1   :  { %v116_v21 = vsel %vm115_vm8, %v114_v20, -inf  ;;  %v122_v23 = vsel %vm115_vm8, %v121_v22, inf }
  0xe2   :  { %117 = vmax.xlane.f32.xlu1 %v116_v21 }
  0xe6   :  { %123 = vmin.xlane.f32.xlu1 %v122_v23 }
 0x16f   :  { %v118_v24 = vpop.xlane.xlu1 %117 }
 0x170   :  { %v125_v25 = vmax.f32 %v118_v24, 1e-06 }
 0x172   :  { %168 = vrsqrt.f32 %v125_v25  ;;  %vm128_vm11 = vcmp.eq.f32.partialorder %v125_v25, inf  ;;  %v131_v33 = vand.u32 2147483648, %v125_v25  ;;  %vm130_vm13 = vcmp.eq.f32.partialorder %v125_v25, 0.0 }
 0x173   :  { %v124_v26 = vpop.xlane.xlu1 %123 }
 0x174   :  { %v133_v27 = vmax.f32 %v124_v26, 1e-06 }
 0x176   :  { %170 = vrsqrt.f32 %v133_v27  ;;  %vm136_vm12 = vcmp.eq.f32.partialorder %v133_v27, inf  ;;  %v139_v34 = vand.u32 2147483648, %v133_v27  ;;  %vm138_vm14 = vcmp.eq.f32.partialorder %v133_v27, 0.0 }
 0x17c   :  { %v169_v28 = vpop.eup %168 }
 0x17d   :  { %v127_v29 = vmul.f32 %v169_v28, %v125_v25 }
 0x17f   :  { %v129_v31 = vsel %vm128_vm11, %v125_v25, %v127_v29 }
 0x180   :  { %v171_v30 = vpop.eup %170  ;;  %v132_v36 = vsel %vm130_vm13, %v131_v33, %v129_v31 }
 0x181   :  { %v135_v32 = vmul.f32 %v171_v30, %v133_v27 }
 0x183   :  { %v137_v35 = vsel %vm136_vm12, %v133_v27, %v135_v32 }
 0x184   :  { %v140_v37 = vsel %vm138_vm14, %v139_v34, %v137_v35 }
 0x185   :  { %v141_v38 = vsub.f32 %v132_v36, %v140_v37 }
 0x187   :  { %v142_v39 = vadd.f32 0.3, %v141_v38 }
 0x189   :  { %v143_v40 = vmax.f32 %v142_v39, 0.0 }
 0x18b   :  { %145 = vst.msk [vmem:[%s234_s5] sm:$0xff] %vm144_vm15, %v143_v40 }

// kernel: tpu_custom_call.1
= control target key start
LH: loop header
LB: loop body
LE: loop exit
PB: predicated region body
PF: predicated region fallthrough
CT: control target
= control target key end

     0   :  { %vm28_vm0 = vcmask 261120   ;;  %v172_v0 = vmov 0.0   ;;  %vm173_vm1 = vmmov 0   ;;  %v174_v4 = vmov 0   ;;  %s229_s0 = inlined_call_operand.vmem [shape: bf16[8,32], index: 0, kind: input, shape index: {}]   ;;  %s230_s1 = inlined_call_operand.vmem [shape: f32[8,1], index: 1, kind: input, shape index: {}]   ;;  %s231_s3 = inlined_call_operand.vmem [shape: s32[8,1], index: 3, kind: input, shape index: {}]   ;;  %s232_s4 = inlined_call_operand.vmem [shape: s32[1,8], index: 4, kind: input, shape index: {}]   ;;  %s233_s2 = inlined_call_operand.vmem [shape: f32[1,8], index: 2, kind: input, shape index: {}]   ;;  %s234_s5 = inlined_call_operand.vmem [shape: f32[8,1], index: 5, kind: output, shape index: {}]  }
   0x1   :  { %157 = vmatprep.subr.bf16.mxu0 %v172_v0  ;;  %v27_v1 = vld [vmem:[%s229_s0] sm:$0xf]  ;;  %159 = vmatprep.mubr.msk.bf16.mxu0 %vm173_vm1, %v172_v0  ;;  %v100_v7 = vlaneseq  ;;  %vm175_vm6 = vmmov 1   ;;  %vm115_vm8 = vcmask 64512   ;;  %vm144_vm15 = vcmask 7168  }
   0x2   :  { %v75_v2 = vld [vmem:[%s230_s1] sm:$0xff]  ;;  %v33_v3 = vsel %vm28_vm0, %v27_v1, 0  ;;  %167 = vset.pattern.permute.xlu0 %v174_v4 }
   0x3   :  { %158 = vmatpush3.bf16.xpose.msra.mxu0 %v33_v3  ;;  %79 = vperm.xlu0 %167, %v75_v2   ;;  %v90_v5 = vld [vmem:[%s231_s3] sm:$0xff]  ;;  %v101_v9 = vand.u32 127, %v100_v7  ;;  %v104_v10 = vshrl.u32 %v100_v7, 7 }
   0x4   :  { %v26_v6 = vld [vmem:[%s229_s0] sm:$0xf] }
   0x5   :  { %v154_v11 = vld [vmem:[%s232_s4] ss:$0 sm:$0xff]  ;;  %vm102_vm2 = vcmp.lt.s32.totalorder %v101_v9, 4  ;;  %vm107_vm3 = vcmp.lt.s32.totalorder %v104_v10, 4 }
   0x6   :  { %v153_v13 = vld [vmem:[%s233_s2] ss:$0 sm:$0xff]  ;;  %vm112_vm5 = vmxor %vm102_vm2, %vm107_vm3 }
   0x7   :  { %93 = vperm.xlu0 %167, %v90_v5  }
   0xa   :  { %160 = vmatmul.mubr.msk.bf16.vlgmr.msra.gmra.mrb[0].mxu0 %vm28_vm0, %v26_v6 }
  0x82   :  { %v80_v8 = vpop.permute.xlu0 %79 }
  0x83   :  { %v88_v14 = vadd.f32 %v153_v13, %v80_v8 }
  0x86   :  { %v94_v12 = vpop.permute.xlu0 %93 }
  0x87   :  { %vm99_vm4 = vcmp.eq.s32.totalorder %v94_v12, %v154_v11 }
  0x88   :  { %vm119_vm7 = vmxor %vm99_vm4, %vm175_vm6 }
  0x89   :  { %vm113_vm9 = vmand %vm112_vm5, %vm99_vm4 }
  0x8a   :  { %vm120_vm10 = vmand %vm112_vm5, %vm119_vm7 }
  0xdd   :  { %v69_v15 = vpop.f32.mrb[0].mxu0 }
  0xde   :  { %v89_v16 = vsub.f32 %v88_v14, %v69_v15  ;;  %v161_v17 = vpop.f32.mrb[1].mxu0 }
  0xdf   :  { %v72_v18 = vpop.f32.mrb[2].mxu0 }
  0xe0   :  { %v162_v19 = vpop.f32.mrb[3].mxu0  ;;  %v114_v20 = vsel %vm113_vm9, %v89_v16, -1e+30  ;;  %v121_v22 = vsel %vm120_vm10, %v89_v16, 1e+30 }
  0xe1   :  { %v116_v21 = vsel %vm115_vm8, %v114_v20, -inf  ;;  %v122_v23 = vsel %vm115_vm8, %v121_v22, inf }
  0xe2   :  { %117 = vmax.xlane.f32.xlu1 %v116_v21 }
  0xe6   :  { %123 = vmin.xlane.f32.xlu1 %v122_v23 }
 0x16f   :  { %v118_v24 = vpop.xlane.xlu1 %117 }
 0x170   :  { %v125_v25 = vmax.f32 %v118_v24, 1e-06 }
 0x172   :  { %168 = vrsqrt.f32 %v125_v25  ;;  %vm128_vm11 = vcmp.eq.f32.partialorder %v125_v25, inf  ;;  %v131_v33 = vand.u32 2147483648, %v125_v25  ;;  %vm130_vm13 = vcmp.eq.f32.partialorder %v125_v25, 0.0 }
 0x173   :  { %v124_v26 = vpop.xlane.xlu1 %123 }
 0x174   :  { %v133_v27 = vmax.f32 %v124_v26, 1e-06 }
 0x176   :  { %170 = vrsqrt.f32 %v133_v27  ;;  %vm136_vm12 = vcmp.eq.f32.partialorder %v133_v27, inf  ;;  %v139_v34 = vand.u32 2147483648, %v133_v27  ;;  %vm138_vm14 = vcmp.eq.f32.partialorder %v133_v27, 0.0 }
 0x17c   :  { %v169_v28 = vpop.eup %168 }
 0x17d   :  { %v127_v29 = vmul.f32 %v169_v28, %v125_v25 }
 0x17f   :  { %v129_v31 = vsel %vm128_vm11, %v125_v25, %v127_v29 }
 0x180   :  { %v171_v30 = vpop.eup %170  ;;  %v132_v36 = vsel %vm130_vm13, %v131_v33, %v129_v31 }
 0x181   :  { %v135_v32 = vmul.f32 %v171_v30, %v133_v27 }
 0x183   :  { %v137_v35 = vsel %vm136_vm12, %v133_v27, %v135_v32 }
 0x184   :  { %v140_v37 = vsel %vm138_vm14, %v139_v34, %v137_v35 }
 0x185   :  { %v141_v38 = vsub.f32 %v132_v36, %v140_v37 }
 0x187   :  { %v142_v39 = vadd.f32 0.3, %v141_v38 }
 0x189   :  { %v143_v40 = vmax.f32 %v142_v39, 0.0 }
 0x18b   :  { %145 = vst.msk [vmem:[%s234_s5] sm:$0xff] %vm144_vm15, %v143_v40 }

</bundles_post_ra>
